<compile_context>
chip_gen: v7x
topology: tpu7x:2x2x1
jax: 0.10.0
libtpu: 0.0.40
codegen_flags: <defaults>
</compile_context>

<pallas_src>
import functools

import jax
import jax.numpy as jnp
from jax.experimental import pallas as pl
from jax.experimental.pallas import tpu as pltpu

_MiB = 1024 * 1024


def _vmem_capacity_bytes():
    """Physical VMEM per core; conservative fallback if the query fails."""
    try:
        info = pltpu.get_tpu_info()
        cap = getattr(info, "vmem_capacity_bytes", None)
        if cap:
            return int(cap)
    except Exception:
        pass
    return 64 * _MiB   # v7x per-TC size (smallest current generation)


def _num_tensorcores():
    """2 TensorCores per chip on v7x; 1 on v5e/v6e."""
    try:
        kind = jax.devices()[0].device_kind.lower()
        if "v7" in kind:
            return 2
    except Exception:
        pass
    return 1


def _triplet_kernel(s_ref, pp_ref, pn_ref, out_ref, acc_ref, *,
                    delta, batch, block_rows, inner_steps):
    c = pl.program_id(0)   # TensorCore-split axis ("parallel")
    i = pl.program_id(1)   # batch-tile axis ("arbitrary", accumulation)

    @pl.when(i == 0)
    def _init():
        acc_ref[...] = jnp.zeros_like(acc_ref)

    # Upcast in-register only; inputs stay in native dtype in VMEM.
    s = s_ref[...].astype(jnp.float32)
    pp = pp_ref[...].astype(jnp.float32)
    pn = pn_ref[...].astype(jnp.float32)

    # ||s-pp||^2 - ||s-pn||^2 == (pn - pp) . ((s - pp) + (s - pn))
    dpp = s - pp
    dpn = s - pn
    margin = jnp.sum((pn - pp) * (dpp + dpn), axis=1, keepdims=True)  # (TB, 1)
    hinge = jnp.maximum(jnp.float32(delta) + margin, 0.0)

    tile_idx = c * inner_steps + i
    row_start = tile_idx * block_rows

    # Interior tiles: plain VPU add into the vector accumulator (no masking).
    @pl.when(row_start + block_rows <= batch)
    def _interior():
        acc_ref[...] += hinge

    # Overhanging (ragged last tile / clamped core-split duplicate) tiles:
    # mask rows that fall outside the real batch by their logical row index.
    @pl.when(row_start + block_rows > batch)
    def _overhang():
        row = jax.lax.broadcasted_iota(jnp.int32, hinge.shape, 0) + row_start
        acc_ref[...] += jnp.where(row < batch, hinge, 0.0)

    @pl.when(i == pl.num_programs(1) - 1)
    def _finalize():
        # Single cross-sublane reduce + compile-time 1/B scale per core split.
        val = jnp.sum(acc_ref[...]) * jnp.float32(1.0 / batch)
        out_ref[...] = jnp.full(out_ref.shape, val, dtype=jnp.float32)


def triplet_loss(s, pp, pn, delta=0.3, *, vmem_budget_bytes=None):
    assert s.shape == pp.shape == pn.shape and s.ndim == 2
    B, D = s.shape
    itemsize = jnp.dtype(s.dtype).itemsize
    # Dtype-specific sublane multiple (packed dtypes pack along sublanes).
    sublane = {4: 8, 2: 16, 1: 32}.get(itemsize, 8)

    cap = _vmem_capacity_bytes()
    if vmem_budget_bytes is None:
        # ~40% of physical VMEM for the three double-buffered input streams
        # plus the per-row accumulator; 48 MiB cap keeps v5e/v6e/v7x all safe.
        vmem_budget_bytes = min(48 * _MiB, cap * 2 // 5)
    vmem_limit = int(max(32 * _MiB,
                         min(cap * 3 // 4, vmem_budget_bytes + 32 * _MiB)))

    # Largest batch tile such that 3 inputs x 2 pipeline buffers x TB x D plus
    # the (TB, 1) f32 VMEM accumulator (worst case 512 B/row after 128-lane
    # padding) fits the budget.  No artificial upper cap: larger steps
    # amortize the fixed per-iteration pipeline overhead.
    per_row_bytes = 3 * 2 * max(D, 1) * itemsize + 512
    tb = vmem_budget_bytes // per_row_bytes
    tb = int(max(sublane, (tb // sublane) * sublane))
    if B <= tb:
        tb = B                      # single full-extent block (always legal)

    n_tiles = int(pl.cdiv(B, tb))
    # Shard batch tiles across TensorCores only on chips that have two of them
    # (v7x); on 1-TC chips the split would only add a redundant clamped tile.
    n_splits = 2 if (_num_tensorcores() >= 2 and n_tiles >= 2) else 1
    inner = int(pl.cdiv(n_tiles, n_splits))

    # Clamp the block index so over-hanging (core-split remainder) steps re-read
    # a valid tile; their rows are masked out inside the kernel.
    in_spec = pl.BlockSpec(
        (tb, D), lambda c, i: (jnp.minimum(c * inner + i, n_tiles - 1), 0))
    out_spec = pl.BlockSpec((8, 128), lambda c, i: (c, 0))

    kernel = functools.partial(_triplet_kernel, delta=float(delta), batch=B,
                               block_rows=tb, inner_steps=inner)

    bytes_in = 3 * B * D * itemsize
    partials = pl.pallas_call(
        kernel,
        grid=(n_splits, inner),
        in_specs=[in_spec, in_spec, in_spec],
        out_specs=out_spec,
        out_shape=jax.ShapeDtypeStruct((n_splits * 8, 128), jnp.float32),
        scratch_shapes=[pltpu.VMEM((tb, 1), jnp.float32)],
        compiler_params=pltpu.CompilerParams(
            dimension_semantics=("parallel", "arbitrary"),
            vmem_limit_bytes=vmem_limit),
        cost_estimate=pl.CostEstimate(
            flops=6 * B * D, transcendentals=0,
            bytes_accessed=bytes_in + n_splits * 8 * 128 * 4),
    )(s, pp, pn)

    # Sum the per-core partial means (each already scaled by 1/B).
    return jnp.sum(partials.reshape(n_splits, 8, 128)[:, 0, 0])


if __name__ == "__main__":
    key = jax.random.PRNGKey(0)
    k1, k2, k3 = jax.random.split(key, 3)

    def ref_loss(a, b, c, delta=0.3):
        dp = jnp.sum((a - b) ** 2, axis=1)
        dn = jnp.sum((a - c) ** 2, axis=1)
        return jnp.mean(jnp.maximum(delta + dp - dn, 0.0))

    # Small case from the module spec (single full-array tile path).
    B, D = 8, 32
    s = jax.random.normal(k1, (B, D), dtype=jnp.float32)
    pp = jax.random.normal(k2, (B, D), dtype=jnp.float32)
    pn = jax.random.normal(k3, (B, D), dtype=jnp.float32)

    loss = triplet_loss(s, pp, pn, delta=0.3)
    jax.block_until_ready(loss)
    assert jnp.allclose(loss, ref_loss(s, pp, pn), rtol=1e-5, atol=1e-5), (
        loss, ref_loss(s, pp, pn))

    # Exercise the tiled / masked (ragged last tile) path by forcing 16-row
    # tiles on a 40-row batch (budget = 16 rows * per-row bytes).
    B2, D2 = 40, 32
    s2 = jax.random.normal(k1, (B2, D2), dtype=jnp.float32)
    pp2 = jax.random.normal(k2, (B2, D2), dtype=jnp.float32)
    pn2 = jax.random.normal(k3, (B2, D2), dtype=jnp.float32)
    loss2 = triplet_loss(s2, pp2, pn2, delta=0.3,
                         vmem_budget_bytes=16 * (3 * 2 * D2 * 4 + 512))
    jax.block_until_ready(loss2)
    assert jnp.allclose(loss2, ref_loss(s2, pp2, pn2), rtol=1e-5, atol=1e-5), (
        loss2, ref_loss(s2, pp2, pn2))

    print("KERNEL_OK")
</pallas_src>

<mosaic_0001>
module attributes {stable_mosaic.version = 11 : i64} {
  func.func @_triplet_kernel(%arg0: i32, %arg1: i32, %arg2: memref<8x32xf32, #tpu.memory_space<vmem>>, %arg3: memref<8x32xf32, #tpu.memory_space<vmem>>, %arg4: memref<8x32xf32, #tpu.memory_space<vmem>>, %arg5: memref<8x128xf32, #tpu.memory_space<vmem>>, %arg6: memref<8x1xf32, #tpu.memory_space<vmem>>) attributes {dimension_semantics = [#tpu.dimension_semantics<parallel>, #tpu.dimension_semantics<arbitrary>], iteration_bounds = array<i64: 1, 1>, scalar_prefetch = 0 : i64, scratch_operands = 1 : i64, tpu.core_type = #tpu.core_type<tc>, window_params = [{transform_indices = @transform_0, window_bounds = array<i64: 8, 32>}, {transform_indices = @transform_1, window_bounds = array<i64: 8, 32>}, {transform_indices = @transform_2, window_bounds = array<i64: 8, 32>}, {transform_indices = @transform_3, window_bounds = array<i64: 8, 128>}]} {
    %c0_i32 = arith.constant 0 : i32
    %0 = arith.cmpi eq, %arg1, %c0_i32 : i32
    %1 = arith.extui %0 : i1 to i32
    %c0_i32_0 = arith.constant 0 : i32
    %2 = arith.cmpi ne, %1, %c0_i32_0 : i32
    scf.if %2 {
      %cst_16 = arith.constant 0.000000e+00 : f32
      %31 = vector.broadcast %cst_16 : f32 to vector<8x1xf32>
      %c0_17 = arith.constant 0 : index
      %c0_18 = arith.constant 0 : index
      %32 = vector.load %arg6[%c0_17, %c0_18] : memref<8x1xf32, #tpu.memory_space<vmem>>, vector<8x1xf32>
      tpu.vector_store %arg6[%c0_17, %c0_18], %31 {strides = array<i32>} : memref<8x1xf32, #tpu.memory_space<vmem>>, vector<8x1xf32>,
    } else {
    }
    %c0 = arith.constant 0 : index
    %c0_1 = arith.constant 0 : index
    %3 = vector.load %arg2[%c0, %c0_1] : memref<8x32xf32, #tpu.memory_space<vmem>>, vector<8x32xf32>
    %c0_2 = arith.constant 0 : index
    %c0_3 = arith.constant 0 : index
    %4 = vector.load %arg3[%c0_2, %c0_3] : memref<8x32xf32, #tpu.memory_space<vmem>>, vector<8x32xf32>
    %c0_4 = arith.constant 0 : index
    %c0_5 = arith.constant 0 : index
    %5 = vector.load %arg4[%c0_4, %c0_5] : memref<8x32xf32, #tpu.memory_space<vmem>>, vector<8x32xf32>
    %6 = arith.subf %3, %4 : vector<8x32xf32>
    %7 = arith.subf %3, %5 : vector<8x32xf32>
    %8 = arith.subf %5, %4 : vector<8x32xf32>
    %9 = arith.addf %6, %7 : vector<8x32xf32>
    %10 = arith.mulf %8, %9 : vector<8x32xf32>
    %cst = arith.constant dense<0.000000e+00> : vector<8xf32>
    %11 = vector.multi_reduction <add>, %10, %cst [1] : vector<8x32xf32> to vector<8xf32>
    %12 = vector.shape_cast %11 : vector<8xf32> to vector<8x1xf32>
    %cst_6 = arith.constant 3.000000e-01 : f32
    %13 = vector.broadcast %cst_6 : f32 to vector<8x1xf32>
    %14 = arith.addf %13, %12 : vector<8x1xf32>
    %cst_7 = arith.constant 0.000000e+00 : f32
    %15 = vector.broadcast %cst_7 : f32 to vector<8x1xf32>
    %16 = arith.maximumf %14, %15 : vector<8x1xf32>
    %c1_i32 = arith.constant 1 : i32
    %17 = arith.muli %arg0, %c1_i32 : i32
    %18 = arith.addi %17, %arg1 : i32
    %c8_i32 = arith.constant 8 : i32
    %19 = arith.muli %18, %c8_i32 : i32
    %c8_i32_8 = arith.constant 8 : i32
    %20 = arith.addi %19, %c8_i32_8 : i32
    %c8_i32_9 = arith.constant 8 : i32
    %21 = arith.cmpi sle, %20, %c8_i32_9 : i32
    %22 = arith.extui %21 : i1 to i32
    %c0_i32_10 = arith.constant 0 : i32
    %23 = arith.cmpi ne, %22, %c0_i32_10 : i32
    scf.if %23 {
      %c0_16 = arith.constant 0 : index
      %c0_17 = arith.constant 0 : index
      %31 = vector.load %arg6[%c0_16, %c0_17] : memref<8x1xf32, #tpu.memory_space<vmem>>, vector<8x1xf32>
      %32 = arith.addf %31, %16 : vector<8x1xf32>
      %c0_18 = arith.constant 0 : index
      %c0_19 = arith.constant 0 : index
      %33 = vector.load %arg6[%c0_18, %c0_19] : memref<8x1xf32, #tpu.memory_space<vmem>>, vector<8x1xf32>
      tpu.vector_store %arg6[%c0_18, %c0_19], %32 {strides = array<i32>} : memref<8x1xf32, #tpu.memory_space<vmem>>, vector<8x1xf32>,
    } else {
    }
    %c8_i32_11 = arith.constant 8 : i32
    %24 = arith.addi %19, %c8_i32_11 : i32
    %c8_i32_12 = arith.constant 8 : i32
    %25 = arith.cmpi sgt, %24, %c8_i32_12 : i32
    %26 = arith.extui %25 : i1 to i32
    %c0_i32_13 = arith.constant 0 : i32
    %27 = arith.cmpi ne, %26, %c0_i32_13 : i32
    scf.if %27 {
      %31 = tpu.iota {dimensions = array<i32: 0>} : vector<8x1xi32>
      %32 = vector.broadcast %19 : i32 to vector<8x1xi32>
      %33 = arith.addi %31, %32 : vector<8x1xi32>
      %c0_16 = arith.constant 0 : index
      %c0_17 = arith.constant 0 : index
      %34 = vector.load %arg6[%c0_16, %c0_17] : memref<8x1xf32, #tpu.memory_space<vmem>>, vector<8x1xf32>
      %c8_i32_18 = arith.constant 8 : i32
      %35 = vector.broadcast %c8_i32_18 : i32 to vector<8x1xi32>
      %36 = arith.cmpi slt, %33, %35 : vector<8x1xi32>
      %cst_19 = arith.constant 0.000000e+00 : f32
      %37 = vector.broadcast %cst_19 : f32 to vector<8x1xf32>
      %38 = arith.select %36, %16, %37 : vector<8x1xi1>, vector<8x1xf32>
      %39 = arith.addf %34, %38 : vector<8x1xf32>
      %c0_20 = arith.constant 0 : index
      %c0_21 = arith.constant 0 : index
      %40 = vector.load %arg6[%c0_20, %c0_21] : memref<8x1xf32, #tpu.memory_space<vmem>>, vector<8x1xf32>
      tpu.vector_store %arg6[%c0_20, %c0_21], %39 {strides = array<i32>} : memref<8x1xf32, #tpu.memory_space<vmem>>, vector<8x1xf32>,
    } else {
    }
    %c0_i32_14 = arith.constant 0 : i32
    %28 = arith.cmpi eq, %arg1, %c0_i32_14 : i32
    %29 = arith.extui %28 : i1 to i32
    %c0_i32_15 = arith.constant 0 : i32
    %30 = arith.cmpi ne, %29, %c0_i32_15 : i32
    scf.if %30 {
      %c0_16 = arith.constant 0 : index
      %c0_17 = arith.constant 0 : index
      %31 = vector.load %arg6[%c0_16, %c0_17] : memref<8x1xf32, #tpu.memory_space<vmem>>, vector<8x1xf32>
      %32 = vector.shape_cast %31 : vector<8x1xf32> to vector<1x8x1xf32>
      %cst_18 = arith.constant dense<0.000000e+00> : vector<1xf32>
      %33 = vector.multi_reduction <add>, %32, %cst_18 [1, 2] : vector<1x8x1xf32> to vector<1xf32>
      %34 = vector.shape_cast %33 : vector<1xf32> to vector<1x1x1xf32>
      %35 = vector.extract %34[0, 0, 0] : f32 from vector<1x1x1xf32>
      %cst_19 = arith.constant 1.250000e-01 : f32
      %36 = arith.mulf %35, %cst_19 : f32
      %37 = vector.broadcast %36 : f32 to vector<8x128xf32>
      %c0_20 = arith.constant 0 : index
      %c0_21 = arith.constant 0 : index
      %38 = vector.load %arg5[%c0_20, %c0_21] : memref<8x128xf32, #tpu.memory_space<vmem>>, vector<8x128xf32>
      tpu.vector_store %arg5[%c0_20, %c0_21], %37 {strides = array<i32>} : memref<8x128xf32, #tpu.memory_space<vmem>>, vector<8x128xf32>,
    } else {
    }
    return
  }
  func.func @transform_0(%arg0: i32, %arg1: i32) -> (i32, i32) {
    %c1_i32 = arith.constant 1 : i32
    %0 = arith.muli %arg0, %c1_i32 : i32
    %1 = arith.addi %0, %arg1 : i32
    %c0_i32 = arith.constant 0 : i32
    %2 = arith.minsi %1, %c0_i32 : i32
    %c0_i32_0 = arith.constant 0 : i32
    %c0_i32_1 = arith.constant 0 : i32
    return %2, %c0_i32_0 : i32, i32
  }
  func.func @transform_1(%arg0: i32, %arg1: i32) -> (i32, i32) {
    %c1_i32 = arith.constant 1 : i32
    %0 = arith.muli %arg0, %c1_i32 : i32
    %1 = arith.addi %0, %arg1 : i32
    %c0_i32 = arith.constant 0 : i32
    %2 = arith.minsi %1, %c0_i32 : i32
    %c0_i32_0 = arith.constant 0 : i32
    %c0_i32_1 = arith.constant 0 : i32
    return %2, %c0_i32_0 : i32, i32
  }
  func.func @transform_2(%arg0: i32, %arg1: i32) -> (i32, i32) {
    %c1_i32 = arith.constant 1 : i32
    %0 = arith.muli %arg0, %c1_i32 : i32
    %1 = arith.addi %0, %arg1 : i32
    %c0_i32 = arith.constant 0 : i32
    %2 = arith.minsi %1, %c0_i32 : i32
    %c0_i32_0 = arith.constant 0 : i32
    %c0_i32_1 = arith.constant 0 : i32
    return %2, %c0_i32_0 : i32, i32
  }
  func.func @transform_3(%arg0: i32, %arg1: i32) -> (i32, i32) {
    %c0_i32 = arith.constant 0 : i32
    %c0_i32_0 = arith.constant 0 : i32
    return %arg0, %c0_i32 : i32, i32
  }
}

</mosaic_0001>

<bundles_post_ra>
// kernel: tpu_custom_call.1
= control target key start
LH: loop header
LB: loop body
LE: loop exit
PB: predicated region body
PF: predicated region fallthrough
CT: control target
= control target key end

     0   :  { %8 = vsyncpa [#allocation4], 0  ;;  %s333_s0 = inlined_call_operand.hbm [shape: f32[8,32], index: 0, kind: input, shape index: {}]   ;;  %s334_s1 = inlined_call_operand.hbm [shape: f32[8,32], index: 1, kind: input, shape index: {}]   ;;  %s335_s2 = inlined_call_operand.hbm [shape: f32[8,32], index: 2, kind: input, shape index: {}]   ;;  %s336_s3 = inlined_call_operand.hbm [shape: f32[8,128], index: 3, kind: output, shape index: {}]  }
   0x1   :  { %9 = vsyncpa [#allocation7], 0 }
   0x2   :  { %10 = vsyncpa [#allocation5], 0  ;;  %s260_s12 = smov [#allocation6]   ;;  %s261_s14 = smov [#allocation3]  }
   0x3   :  { %s37_s13 = sshll.u32 %s260_s12, 4  ;;  %s22_s15 = sshll.u32 %s261_s14, 4  ;;  %s38_s13 = int_to_ptr.vmem [resolvable:$true] %s37_s13  ;;  %s23_s15 = int_to_ptr.vmem [resolvable:$true] %s22_s15 }
   0x4   :  { %s166_s18 = scalar_lea.hbm %s334_s1, 128 }
   0x5   :  { %p167_p0 = scmp.ne.s32.totalorder %s334_s1, %s166_s18  ;;  %p170_p1 = scmp.lt.u32.totalorder %s166_s18, %s334_s1 }
   0x7   :  { %p172_p2 = pnand %p170_p1, %p167_p0 }
   0x9   :  { %175 = shalt.err (!%p172_p2)
}
   0xa   :  { %s176_s23 = scalar_lea.vmem %s38_s13, 128  ;;  %p181_p4 = scmp.lt.s32.totalorder %s38_s13, %s38_s13 }
   0xb   :  { %p177_p3 = scmp.ne.s32.totalorder %s38_s13, %s176_s23  ;;  %p182_p5 = scmp.lt.s32.totalorder %s176_s23, %s176_s23 }
   0xd   :  { %p183_p6 = por %p182_p5, %p181_p4 }
   0xf   :  { %p184_p7 = pnand %p183_p6, %p177_p3 }
  0x11   :  { %187 = shalt.err (!%p184_p7)
}
  0x12   :  { %40 = dma.hbm_to_vmem [thread:$0]  %s334_s1, 128, %s38_s13, [#allocation7]  }
  0x13   :  { %s188_s28 = scalar_lea.hbm %s333_s0, 128 }
  0x14   :  { %p189_p8 = scmp.ne.s32.totalorder %s333_s0, %s188_s28  ;;  %p192_p9 = scmp.lt.u32.totalorder %s188_s28, %s333_s0 }
  0x16   :  { %p194_p10 = pnand %p192_p9, %p189_p8 }
  0x18   :  { %197 = shalt.err (!%p194_p10)
}
  0x19   :  { %s198_s6 = scalar_lea.vmem %s23_s15, 128  ;;  %p203_p12 = scmp.lt.s32.totalorder %s23_s15, %s23_s15 }
  0x1a   :  { %p199_p11 = scmp.ne.s32.totalorder %s23_s15, %s198_s6  ;;  %p204_p13 = scmp.lt.s32.totalorder %s198_s6, %s198_s6 }
  0x1c   :  { %p205_p0 = por %p204_p13, %p203_p12 }
  0x1e   :  { %p206_p1 = pnand %p205_p0, %p199_p11 }
  0x20   :  { %209 = shalt.err (!%p206_p1)
}
  0x21   :  { %25 = dma.hbm_to_vmem [thread:$0]  %s333_s0, 128, %s23_s15, [#allocation4]  }
  0x22   :  { %s262_s8 = smov [#allocation8]   ;;  %s210_s12 = scalar_lea.hbm %s335_s2, 128 }
  0x23   :  { %s52_s9 = sshll.u32 %s262_s8, 4  ;;  %p211_p2 = scmp.ne.s32.totalorder %s335_s2, %s210_s12  ;;  %s53_s9 = int_to_ptr.vmem [resolvable:$true] %s52_s9 }
  0x24   :  { %p214_p3 = scmp.lt.u32.totalorder %s210_s12, %s335_s2 }
  0x26   :  { %p216_p4 = pnand %p214_p3, %p211_p2 }
  0x28   :  { %219 = shalt.err (!%p216_p4)
}
  0x29   :  { %s220_s18 = scalar_lea.vmem %s53_s9, 128  ;;  %p225_p6 = scmp.lt.s32.totalorder %s53_s9, %s53_s9 }
  0x2a   :  { %p221_p5 = scmp.ne.s32.totalorder %s53_s9, %s220_s18  ;;  %p226_p7 = scmp.lt.s32.totalorder %s220_s18, %s220_s18 }
  0x2c   :  { %p227_p8 = por %p226_p7, %p225_p6 }
  0x2e   :  { %p228_p9 = pnand %p227_p8, %p221_p5 }
  0x30   :  { %231 = shalt.err (!%p228_p9)
}
  0x31   :  { %55 = dma.hbm_to_vmem [thread:$0]  %s335_s2, 128, %s53_s9, [#allocation7]  }
  0x32   :  { %254 = dma.done.wait [#allocation4], 128  }
  0x33   :  { %255 = vsyncadd [#allocation4], 4294967168 }
  0x34   :  { %256 = dma.done.wait [#allocation7], 256  }
  0x35   :  { %257 = vsyncadd [#allocation7], 4294967040  ;;  %v80_v0 = vld [vmem:[#allocation3] sm:$0xff]  ;;  %v81_v1 = vld [vmem:[#allocation6] sm:$0xff]  ;;  %vm88_vm0 = vcmask 261120   ;;  %vm78_vm1 = vcmask 7168  }
  0x36   :  { %v82_v2 = vld [vmem:[#allocation8] sm:$0xff]  ;;  %v83_v3 = vsub.f32 %v80_v0, %v81_v1  ;;  %v263_v9 = vmov 0.0   ;;  %s264_s2 = smov [#allocation9]  }
  0x37   :  { %v84_v4 = vsub.f32 %v80_v0, %v82_v2  ;;  %v85_v5 = vsub.f32 %v82_v2, %v81_v1  ;;  %79 = vst.msk [vmem:[#allocation2] sm:$0xff] %vm78_vm1, %v263_v9  ;;  %s143_s19 = sshll.u32 %s264_s2, 4  ;;  %s144_s19 = int_to_ptr.vmem [resolvable:$true] %s143_s19 }
  0x38   :  { %s232_s22 = scalar_lea.vmem %s144_s19, 128  ;;  %p237_p11 = scmp.lt.s32.totalorder %s144_s19, %s144_s19 }
  0x39   :  { %v86_v6 = vadd.f32 %v84_v4, %v83_v3  ;;  %p233_p10 = scmp.ne.s32.totalorder %s144_s19, %s232_s22  ;;  %p238_p12 = scmp.lt.s32.totalorder %s232_s22, %s232_s22 }
  0x3b   :  { %v87_v7 = vmul.f32 %v86_v6, %v85_v5  ;;  %p239_p13 = por %p238_p12, %p237_p11 }
  0x3d   :  { %v89_v8 = vsel %vm88_vm0, %v87_v7, 0.0  ;;  %p240_p0 = pnand %p239_p13, %p233_p10 }
  0x3e   :  { %90 = vadd.xlane.f32.xlu0 %v89_v8  ;;  %v101_v12 = vld [vmem:[#allocation2] sm:$0xff] }
  0xcb   :  { %v91_v10 = vpop.xlane.xlu0 %90 }
  0xcc   :  { %v92_v11 = vadd.f32 0.3, %v91_v10 }
  0xce   :  { %v93_v13 = vmax.f32 %v92_v11, 0.0 }
  0xd0   :  { %v102_v14 = vadd.f32 %v101_v12, %v93_v13 }
  0xd2   :  { %104 = vst.msk [vmem:[#allocation2] sm:$0xff] %vm78_vm1, %v102_v14 }
  0xd9   :  { %v122_v15 = vld [vmem:[#allocation2] sm:$0xff] }
  0xda   :  { %v124_v16 = vsel %vm78_vm1, %v122_v15, 0.0 }
  0xdb   :  { %125 = vadd.xlane.f32.xlu0 %v124_v16 }
 0x168   :  { %v126_v17 = vpop.xlane.xlu0 %125 }
 0x169   :  { %v127_v18 = vrot.slane %v126_v17, 4 }
 0x16b   :  { %v128_v19 = vadd.f32 %v127_v18, %v126_v17 }
 0x16d   :  { %v129_v20 = vrot.slane %v128_v19, 2 }
 0x16f   :  { %v130_v21 = vadd.f32 %v129_v20, %v128_v19 }
 0x171   :  { %v131_v22 = vrot.slane %v130_v21, 1 }
 0x173   :  { %v132_v23 = vadd.f32 %v131_v22, %v130_v21 }
 0x175   :  { %159 = vpush %v132_v23 }
 0x1a6   :  { %s160_s20 = spop %159 }
 0x1a7   :  { %s134_s21 = smul.f32 0.125, %s160_s20 }
 0x1a9   :  { %v135_v24 = vstv %s134_s21 }
 0x1aa   :  { %136 = vst [vmem:[#allocation9] sm:$0xff] %v135_v24 }
 0x1ab   :  { %243 = shalt.err (!%p240_p0)
}
 0x1ac   :  { %s244_s25 = scalar_lea.hbm %s336_s3, 128 }
 0x1ad   :  { %p245_p1 = scmp.ne.s32.totalorder %s336_s3, %s244_s25  ;;  %p248_p2 = scmp.lt.u32.totalorder %s244_s25, %s336_s3 }
 0x1af   :  { %p250_p3 = pnand %p248_p2, %p245_p1 }
 0x1b1   :  { %253 = shalt.err (!%p250_p3)
}
 0x1b2   :  { %146 = dma.vmem_to_hbm [thread:$0]  %s144_s19, 128, %s336_s3, [#allocation5]  }
 0x1b3   :  { %258 = dma.done.wait [#allocation5], 128  }
 0x1b4   :  { %259 = vsyncadd [#allocation5], 4294967168 }
 0x1b5   :  { %150 = vsyncpa [#allocation4], 1 }
 0x1b6   :  { %151 = vsyncpa [#allocation7], 1 }
 0x1b7   :  { %152 = vsyncpa [#allocation5], 1 }

</bundles_post_ra>
